<compile_context>
chip_gen: v6e
topology: v6e:2x2x1
jax: 0.10.0
libtpu: 0.0.40
codegen_flags: <defaults>
</compile_context>

<pallas_src>
import jax
import jax.numpy as jnp
from jax.experimental import pallas as pl
from jax.experimental.pallas import tpu as pltpu


def _round_up(v, m):
    return ((v + m - 1) // m) * m


def _vmem_limit_bytes():
    """Generation-specific scoped-VMEM limit (v7x: 64 MiB/TC; v5e/v6e: 128 MiB)."""
    try:
        kind = jax.devices()[0].device_kind.lower()
    except Exception:
        kind = ""
    if "v7" in kind:
        return 48 * 1024 * 1024
    return 100 * 1024 * 1024


def edges_to_dense_adj(edge_index, edge_weight, num_nodes):
    """A[dst, src] = sum of weights of edges src->dst (scatter-add semantics)."""
    src = edge_index[0]
    dst = edge_index[1]
    a = jnp.zeros((num_nodes, num_nodes), jnp.float32)
    return a.at[dst, src].add(edge_weight)


def digcn_inception_block(x, w_ln, b_ln, w1, b1, a1, w2, b2, a2, *, tm_max=1024):
    """x: [N, F_in]; w_*: [F_in, F_out] (already W^T); b_*: [1, F_out] or [F_out];
    a1/a2: dense adjacencies [N, N] with A[dst, src] = w."""
    n, f_in = x.shape
    f_out = w_ln.shape[1]

    f_pad = _round_up(f_out, 128)       # lane-dense output slabs
    f_in_pad = _round_up(f_in, 128)

    vmem_limit = _vmem_limit_bytes()
    budget = (vmem_limit * 3) // 4       # headroom for compiler scratch

    # Row-tile size: largest candidate whose *full* per-call footprint fits the
    # budget.  n_pad is a multiple of both tm and 128 (lane-dense A columns and
    # MXU-friendly contraction), so A stays square [n_pad, n_pad].
    tm_cap = min(tm_max, _round_up(n, 128))
    tm, n_pad = 8, _round_up(n, 128)
    for cand in (1024, 512, 256, 128, 64, 32, 16, 8):
        if cand > tm_cap:
            continue
        n_p = _round_up(n, max(cand, 128))
        # Propagate kernel: A slab (bf16, 2 bufs) + resident h (bf16, x2) +
        # out block (f32, 2 bufs) + bias.
        prop = (2 * (2 * cand * n_p * 2)
                + 2 * (2 * n_p * f_pad * 2)
                + 2 * (cand * 2 * f_pad * 4)
                + 2 * (2 * f_pad * 4))
        # Transform kernel: x tile (f32) + W_ln (f32) + [W1|W2] (bf16) +
        # x0 / h output blocks (all double-buffered) + bias.
        xform = (2 * (cand * f_in_pad * 4)
                 + 2 * (f_in_pad * f_pad * 4)
                 + 2 * (f_in_pad * 2 * f_pad * 2)
                 + 2 * (cand * f_pad * 4)
                 + 2 * (2 * cand * f_pad * 2)
                 + 2 * (f_pad * 4))
        if max(prop, xform) <= budget:
            tm, n_pad = cand, n_p
            break

    def pad2(arr, r, c, dtype=jnp.float32):
        arr = jnp.asarray(arr, dtype)  # cast *before* padding (no f32 N^2 temps)
        return jnp.pad(arr, ((0, r - arr.shape[0]), (0, c - arr.shape[1])))

    x_p = pad2(x, n_pad, f_in_pad)
    wln_p = pad2(w_ln, f_in_pad, f_pad)
    w12_p = jnp.concatenate(
        [pad2(w1, f_in_pad, f_pad, jnp.bfloat16),
         pad2(w2, f_in_pad, f_pad, jnp.bfloat16)], axis=1)
    bln_p = pad2(jnp.reshape(b_ln, (1, -1)), 1, f_pad)
    b12_p = jnp.concatenate(
        [pad2(jnp.reshape(b1, (1, -1)), 1, f_pad),
         pad2(jnp.reshape(b2, (1, -1)), 1, f_pad)], axis=1)
    # Stacked bf16 adjacencies (halves HBM bytes on the bandwidth-bound A@h).
    # NOTE: bf16 A/h gives ~1e-2 relative error on x1/x2 -- fine for inference;
    # keep A in f32 on v5e/v6e if this block is trained.
    a_stack = jnp.stack([pad2(a1, n_pad, n_pad, jnp.bfloat16),
                         pad2(a2, n_pad, n_pad, jnp.bfloat16)])

    f = f_pad  # static, closed over by the kernels

    # ---- Kernel 1: feature transform (each row of x touched exactly once) ---
    #   x0 = x @ W_ln + b_ln      (f32 operands, matches nn.Linear)
    #   h  = [x @ W1 ; x @ W2]    (bf16 operands, f32 MXU accumulate -> bf16)
    def xform_kernel(x_ref, wln_ref, w12_ref, bln_ref, x0_ref, h_ref):
        xt = x_ref[...]                                           # [tm, f_in_pad]
        x0_ref[...] = (jnp.dot(xt, wln_ref[...],
                               preferred_element_type=jnp.float32)
                       + bln_ref[...])
        h12 = jnp.dot(xt.astype(jnp.bfloat16), w12_ref[...],
                      preferred_element_type=jnp.float32).astype(jnp.bfloat16)
        h_ref[0] = h12[:, 0:f]          # 128-lane-aligned slices
        h_ref[1] = h12[:, f:2 * f]

    x0_p, h_p = pl.pallas_call(
        xform_kernel,
        out_shape=(jax.ShapeDtypeStruct((n_pad, f_pad), jnp.float32),
                   jax.ShapeDtypeStruct((2, n_pad, f_pad), jnp.bfloat16)),
        grid_spec=pltpu.PrefetchScalarGridSpec(
            num_scalar_prefetch=0,
            grid=(n_pad // tm,),
            in_specs=[
                pl.BlockSpec((tm, f_in_pad), lambda i: (i, 0)),        # x row tile
                pl.BlockSpec((f_in_pad, f_pad), lambda i: (0, 0)),     # W_ln
                pl.BlockSpec((f_in_pad, 2 * f_pad), lambda i: (0, 0)), # [W1 | W2] bf16
                pl.BlockSpec((1, f_pad), lambda i: (0, 0)),            # b_ln
            ],
            out_specs=[
                pl.BlockSpec((tm, f_pad), lambda i: (i, 0)),           # x0
                pl.BlockSpec((2, tm, f_pad), lambda i: (0, i, 0)),     # h (stacked)
            ],
        ),
        compiler_params=pltpu.CompilerParams(
            dimension_semantics=("parallel",),
            vmem_limit_bytes=vmem_limit,
        ),
    )(x_p, wln_p, w12_p, bln_p)

    # ---- Kernel 2: propagate  x1 = A1 @ h1 + b1 ; x2 = A2 @ h2 + b2 ---------
    # HBM-bound on the streamed A row slabs; h / biases stay resident in VMEM.
    def prop_kernel(a_ref, h_ref, b_ref, out_ref):
        y1 = jnp.dot(a_ref[0], h_ref[0], preferred_element_type=jnp.float32)
        out_ref[:, 0:f] = y1 + b_ref[:, 0:f]
        y2 = jnp.dot(a_ref[1], h_ref[1], preferred_element_type=jnp.float32)
        out_ref[:, f:2 * f] = y2 + b_ref[:, f:2 * f]

    out12 = pl.pallas_call(
        prop_kernel,
        out_shape=jax.ShapeDtypeStruct((n_pad, 2 * f_pad), jnp.float32),
        grid_spec=pltpu.PrefetchScalarGridSpec(
            num_scalar_prefetch=0,
            grid=(n_pad // tm,),
            in_specs=[
                pl.BlockSpec((2, tm, n_pad), lambda i: (0, i, 0)),      # [A1;A2] row slabs
                pl.BlockSpec((2, n_pad, f_pad), lambda i: (0, 0, 0)),   # h (resident)
                pl.BlockSpec((1, 2 * f_pad), lambda i: (0, 0)),         # [b1 | b2]
            ],
            out_specs=pl.BlockSpec((tm, 2 * f_pad), lambda i: (i, 0)),  # [x1 | x2]
        ),
        compiler_params=pltpu.CompilerParams(
            dimension_semantics=("parallel",),
            vmem_limit_bytes=vmem_limit,
        ),
    )(a_stack, h_p, b12_p)

    x0 = x0_p[:n, :f_out]
    x1 = out12[:n, 0:f_out]
    x2 = out12[:n, f_pad:f_pad + f_out]
    return x0, x1, x2


if __name__ == "__main__":
    key = jax.random.PRNGKey(0)

    # Small shapes implied by the forward pass: N nodes, in_dim features, out_dim hidden.
    N, IN_DIM, OUT_DIM, E = 16, 8, 32, 48

    keys = jax.random.split(key, 10)
    x = jax.random.normal(keys[0], (N, IN_DIM), jnp.float32)

    # Deterministic parameter init (shapes from __init__: Linear + 2x DiGCNConv).
    w_ln = jax.random.normal(keys[1], (IN_DIM, OUT_DIM), jnp.float32) * 0.1  # Linear weight^T
    b_ln = jax.random.normal(keys[2], (1, OUT_DIM), jnp.float32) * 0.1
    w1 = jax.random.normal(keys[3], (IN_DIM, OUT_DIM), jnp.float32) * 0.1
    b1 = jax.random.normal(keys[4], (1, OUT_DIM), jnp.float32) * 0.1
    w2 = jax.random.normal(keys[5], (IN_DIM, OUT_DIM), jnp.float32) * 0.1
    b2 = jax.random.normal(keys[6], (1, OUT_DIM), jnp.float32) * 0.1

    # Deterministic random graphs (edge_index: [2, E] int, edge_weight: [E] float).
    edge_index = jax.random.randint(keys[7], (2, E), 0, N, jnp.int32)
    edge_weight = jax.random.uniform(keys[8], (E,), jnp.float32)
    edge_index2 = jax.random.randint(keys[9], (2, E), 0, N, jnp.int32)
    edge_weight2 = jax.random.uniform(jax.random.fold_in(key, 123), (E,), jnp.float32)

    # Glue: sparse edges -> dense adjacency (A[dst, src] = w); matmuls run in the kernels.
    a1 = edges_to_dense_adj(edge_index, edge_weight, N)
    a2 = edges_to_dense_adj(edge_index2, edge_weight2, N)

    x0, x1, x2 = digcn_inception_block(x, w_ln, b_ln, w1, b1, a1, w2, b2, a2)
    jax.block_until_ready((x0, x1, x2))

    # Pure-JAX f32 reference (same math as the PyTorch forward).
    x0_ref = x @ w_ln + b_ln
    x1_ref = a1 @ (x @ w1) + b1
    x2_ref = a2 @ (x @ w2) + b2

    assert x0.shape == (N, OUT_DIM) and x1.shape == (N, OUT_DIM) and x2.shape == (N, OUT_DIM)
    # x0 path keeps f32 operands (tolerance allows for MXU f32-via-bf16-pass emulation);
    # x1/x2 use bf16 A/h with f32 accumulate.
    assert jnp.allclose(x0, x0_ref, atol=2e-3, rtol=2e-3), "x0 mismatch"
    assert jnp.allclose(x1, x1_ref, atol=5e-2, rtol=5e-2), "x1 mismatch"
    assert jnp.allclose(x2, x2_ref, atol=5e-2, rtol=5e-2), "x2 mismatch"

    print("KERNEL_OK")
</pallas_src>

<mosaic_0001>
module attributes {stable_mosaic.version = 11 : i64} {
  func.func @xform_kernel(%arg0: i32, %arg1: memref<128x128xf32, #tpu.memory_space<vmem>>, %arg2: memref<128x128xf32, #tpu.memory_space<vmem>>, %arg3: memref<128x256xbf16, #tpu.memory_space<vmem>>, %arg4: memref<1x128xf32, #tpu.memory_space<vmem>>, %arg5: memref<128x128xf32, #tpu.memory_space<vmem>>, %arg6: memref<2x128x128xbf16, #tpu.memory_space<vmem>>) attributes {dimension_semantics = [#tpu.dimension_semantics<parallel>], iteration_bounds = array<i64: 1>, scalar_prefetch = 0 : i64, scratch_operands = 0 : i64, tpu.core_type = #tpu.core_type<tc>, window_params = [{transform_indices = @transform_0, window_bounds = array<i64: 128, 128>}, {pipeline_mode = #tpu.pipeline_mode<synchronous>, transform_indices = @transform_1, window_bounds = array<i64: 128, 128>}, {pipeline_mode = #tpu.pipeline_mode<synchronous>, transform_indices = @transform_2, window_bounds = array<i64: 128, 256>}, {pipeline_mode = #tpu.pipeline_mode<synchronous>, transform_indices = @transform_3, window_bounds = array<i64: 1, 128>}, {transform_indices = @transform_4, window_bounds = array<i64: 128, 128>}, {transform_indices = @transform_5, window_bounds = array<i64: 2, 128, 128>}]} {
    %c0 = arith.constant 0 : index
    %c0_0 = arith.constant 0 : index
    %0 = vector.load %arg1[%c0, %c0_0] : memref<128x128xf32, #tpu.memory_space<vmem>>, vector<128x128xf32>
    %c0_1 = arith.constant 0 : index
    %c0_2 = arith.constant 0 : index
    %1 = vector.load %arg2[%c0_1, %c0_2] : memref<128x128xf32, #tpu.memory_space<vmem>>, vector<128x128xf32>
    %cst = arith.constant dense<0.000000e+00> : vector<128x128xf32>
    %2 = tpu.matmul %0, %1, %cst {dimension_numbers = #tpu.dot_dimension_numbers<[1], [0], [0], [1], [0, 0, 1, 1], [], []>} : vector<128x128xf32>, vector<128x128xf32>, vector<128x128xf32> -> vector<128x128xf32>
    %c0_3 = arith.constant 0 : index
    %c0_4 = arith.constant 0 : index
    %3 = vector.load %arg4[%c0_3, %c0_4] : memref<1x128xf32, #tpu.memory_space<vmem>>, vector<1x128xf32>
    %4 = vector.broadcast %3 : vector<1x128xf32> to vector<128x128xf32>
    %5 = arith.addf %2, %4 : vector<128x128xf32>
    %c0_5 = arith.constant 0 : index
    %c0_6 = arith.constant 0 : index
    %6 = vector.load %arg5[%c0_5, %c0_6] : memref<128x128xf32, #tpu.memory_space<vmem>>, vector<128x128xf32>
    tpu.vector_store %arg5[%c0_5, %c0_6], %5 {strides = array<i32>} : memref<128x128xf32, #tpu.memory_space<vmem>>, vector<128x128xf32>,
    %7 = arith.truncf %0 : vector<128x128xf32> to vector<128x128xbf16>
    %c0_7 = arith.constant 0 : index
    %c0_8 = arith.constant 0 : index
    %8 = vector.load %arg3[%c0_7, %c0_8] : memref<128x256xbf16, #tpu.memory_space<vmem>>, vector<128x256xbf16>
    %cst_9 = arith.constant dense<0.000000e+00> : vector<128x256xf32>
    %9 = tpu.matmul %7, %8, %cst_9 {dimension_numbers = #tpu.dot_dimension_numbers<[1], [0], [0], [1], [0, 0, 1, 1], [], []>} : vector<128x128xbf16>, vector<128x256xbf16>, vector<128x256xf32> -> vector<128x256xf32>
    %10 = arith.truncf %9 : vector<128x256xf32> to vector<128x256xbf16>
    %11 = vector.extract_strided_slice %10 {offsets = [0, 0], sizes = [128, 128], strides = [1, 1]} : vector<128x256xbf16> to vector<128x128xbf16>
    %c0_10 = arith.constant 0 : index
    %c0_11 = arith.constant 0 : index
    %c0_12 = arith.constant 0 : index
    %12 = vector.load %arg6[%c0_10, %c0_11, %c0_12] : memref<2x128x128xbf16, #tpu.memory_space<vmem>>, vector<1x128x128xbf16>
    %13 = vector.shape_cast %12 : vector<1x128x128xbf16> to vector<128x128xbf16>
    %14 = vector.shape_cast %11 : vector<128x128xbf16> to vector<1x128x128xbf16>
    tpu.vector_store %arg6[%c0_10, %c0_11, %c0_12], %14 {strides = array<i32>} : memref<2x128x128xbf16, #tpu.memory_space<vmem>>, vector<1x128x128xbf16>,
    %15 = vector.extract_strided_slice %10 {offsets = [0, 128], sizes = [128, 128], strides = [1, 1]} : vector<128x256xbf16> to vector<128x128xbf16>
    %c1 = arith.constant 1 : index
    %c0_13 = arith.constant 0 : index
    %c0_14 = arith.constant 0 : index
    %16 = vector.load %arg6[%c1, %c0_13, %c0_14] : memref<2x128x128xbf16, #tpu.memory_space<vmem>>, vector<1x128x128xbf16>
    %17 = vector.shape_cast %16 : vector<1x128x128xbf16> to vector<128x128xbf16>
    %18 = vector.shape_cast %15 : vector<128x128xbf16> to vector<1x128x128xbf16>
    tpu.vector_store %arg6[%c1, %c0_13, %c0_14], %18 {strides = array<i32>} : memref<2x128x128xbf16, #tpu.memory_space<vmem>>, vector<1x128x128xbf16>,
    return
  }
  func.func @transform_0(%arg0: i32) -> (i32, i32) {
    %c0_i32 = arith.constant 0 : i32
    %c0_i32_0 = arith.constant 0 : i32
    return %arg0, %c0_i32 : i32, i32
  }
  func.func @transform_1(%arg0: i32) -> (i32, i32) {
    %c0_i32 = arith.constant 0 : i32
    %c0_i32_0 = arith.constant 0 : i32
    %c0_i32_1 = arith.constant 0 : i32
    return %c0_i32, %c0_i32_0 : i32, i32
  }
  func.func @transform_2(%arg0: i32) -> (i32, i32) {
    %c0_i32 = arith.constant 0 : i32
    %c0_i32_0 = arith.constant 0 : i32
    %c0_i32_1 = arith.constant 0 : i32
    return %c0_i32, %c0_i32_0 : i32, i32
  }
  func.func @transform_3(%arg0: i32) -> (i32, i32) {
    %c0_i32 = arith.constant 0 : i32
    %c0_i32_0 = arith.constant 0 : i32
    %c0_i32_1 = arith.constant 0 : i32
    return %c0_i32, %c0_i32_0 : i32, i32
  }
  func.func @transform_4(%arg0: i32) -> (i32, i32) {
    %c0_i32 = arith.constant 0 : i32
    %c0_i32_0 = arith.constant 0 : i32
    return %arg0, %c0_i32 : i32, i32
  }
  func.func @transform_5(%arg0: i32) -> (i32, i32, i32) {
    %c0_i32 = arith.constant 0 : i32
    %c0_i32_0 = arith.constant 0 : i32
    %c0_i32_1 = arith.constant 0 : i32
    return %c0_i32, %arg0, %c0_i32_0 : i32, i32, i32
  }
}

</mosaic_0001>

<bundles_post_ra>
// kernel: tpu_custom_call.1
= control target key start
LH: loop header
LB: loop body
LE: loop exit
PB: predicated region body
PF: predicated region fallthrough
CT: control target
= control target key end

     0   :  { %11 = vsyncpa [#allocation3], 0  ;;  %s1264_s0 = inlined_call_operand.hbm [shape: f32[128,128], index: 0, kind: input, shape index: {}]   ;;  %s1265_s1 = inlined_call_operand.hbm [shape: f32[128,128], index: 1, kind: input, shape index: {}]   ;;  %s1266_s2 = inlined_call_operand.hbm [shape: bf16[128,256], index: 2, kind: input, shape index: {}]   ;;  %s1267_s3 = inlined_call_operand.vmem [shape: f32[1,128], index: 3, kind: input, shape index: {}]   ;;  %s1268_s4 = inlined_call_operand.hbm [shape: f32[128,128], index: 4, kind: output, shape index: {0}]   ;;  %s1269_s5 = inlined_call_operand.hbm [shape: bf16[2,128,128], index: 5, kind: output, shape index: {1}]  }
   0x1   :  { %12 = vsyncpa [#allocation6], 0 }
   0x2   :  { %13 = vsyncpa [#allocation4], 0 }
   0x3   :  { %14 = vsyncpa [#allocation10], 0  ;;  %s1096_s18 = smov [#allocation5]   ;;  %s1097_s20 = smov [#allocation2]  }
   0x4   :  { %s32_s19 = sshll.u32 %s1096_s18, 4  ;;  %s20_s21 = sshll.u32 %s1097_s20, 4  ;;  %s33_s19 = int_to_ptr.vmem [resolvable:$true] %s32_s19  ;;  %s21_s21 = int_to_ptr.vmem [resolvable:$true] %s20_s21 }
   0x5   :  { %s996_s22 = scalar_lea.vmem %s33_s19, 2048  ;;  %p1001_p1 = scmp.lt.s32.totalorder %s33_s19, %s33_s19 }
   0x6   :  { %p997_p0 = scmp.ne.s32.totalorder %s33_s19, %s996_s22  ;;  %p1002_p2 = scmp.lt.s32.totalorder %s996_s22, %s996_s22 }
   0x8   :  { %p1003_p3 = por %p1002_p2, %p1001_p1 }
   0xa   :  { %p1004_p4 = pnand %p1003_p3, %p997_p0 }
   0xc   :  { %1007 = shalt.err (!%p1004_p4)
}
   0xd   :  { %s1098_s23 = smov 128   ;;  %s1099_s24 = smov 8  }
   0xe   :  { %38 = dma.hbm_to_vmem [thread:$0]  %s1265_s1, 2048, %s33_s19, [#allocation6], %s1098_s23, %s1098_s23, %s1099_s24  }
   0xf   :  { %s1016_s27 = scalar_lea.vmem %s21_s21, 2048  ;;  %p1021_p6 = scmp.lt.s32.totalorder %s21_s21, %s21_s21 }
  0x10   :  { %p1017_p5 = scmp.ne.s32.totalorder %s21_s21, %s1016_s27  ;;  %p1022_p7 = scmp.lt.s32.totalorder %s1016_s27, %s1016_s27 }
  0x12   :  { %p1023_p8 = por %p1022_p7, %p1021_p6 }
  0x14   :  { %p1024_p9 = pnand %p1023_p8, %p1017_p5 }
  0x16   :  { %1027 = shalt.err (!%p1024_p9)
}
  0x17   :  { %26 = dma.hbm_to_vmem [thread:$0]  %s1264_s0, 2048, %s21_s21, [#allocation3], %s1098_s23, %s1098_s23, %s1099_s24  }
  0x18   :  { %s1100_s30 = smov [#allocation7]  }
  0x19   :  { %s44_s6 = sshll.u32 %s1100_s30, 4  ;;  %s45_s6 = int_to_ptr.vmem [resolvable:$true] %s44_s6 }
  0x1a   :  { %s1036_s7 = scalar_lea.vmem %s45_s6, 2048  ;;  %p1041_p11 = scmp.lt.s32.totalorder %s45_s6, %s45_s6 }
  0x1b   :  { %p1037_p10 = scmp.ne.s32.totalorder %s45_s6, %s1036_s7  ;;  %p1042_p12 = scmp.lt.s32.totalorder %s1036_s7, %s1036_s7 }
  0x1d   :  { %p1043_p13 = por %p1042_p12, %p1041_p11 }
  0x1f   :  { %p1044_p0 = pnand %p1043_p13, %p1037_p10 }
  0x21   :  { %1047 = shalt.err (!%p1044_p0)
}
  0x22   :  { %50 = dma.hbm_to_vmem [thread:$0]  %s1266_s2, 2048, %s45_s6, [#allocation6], %s1098_s23, %s1098_s23, %s1099_s24  }
  0x23   :  { %1088 = dma.done.wait [#allocation3], 2048  }
  0x24   :  { %1089 = vsyncadd [#allocation3], 4294965248 }
  0x25   :  { %1090 = dma.done.wait [#allocation6], 4096  }
  0x26   :  { %1091 = vsyncadd [#allocation6], 4294963200  ;;  %v1101_v0 = vmov 0   ;;  %v94_v1 = vld [vmem:[#allocation5 + $0x78] sm:$0xff]  ;;  %v93_v2 = vld [vmem:[#allocation5 + $0x70] sm:$0xff] }
  0x27   :  { %419 = vmatprep.mubr.bf16.mxu1 %v1101_v0  ;;  %882 = vmatprep.subr.mxu0 %v94_v1  ;;  %v1155_v3 = vld [vmem:[#allocation7 + $0x74] ss:$8 sps:$4 sm:$0xff]   ;;  %v1157_v4 = vld [vmem:[#allocation7 + $0x70] ss:$8 sps:$4 sm:$0xff]   ;;  %v92_v5 = vld [vmem:[#allocation5 + $0x68] sm:$0xff] }
  0x28   :  { %883 = vmatpush3.msra.mxu0 %v94_v1  ;;  %938 = vmatprep.subr.bf16.mxu1 %v1155_v3  ;;  %v1160_v6 = vld [vmem:[#allocation7 + $0x64] ss:$8 sps:$4 sm:$0xff]   ;;  %v1163_v8 = vld [vmem:[#allocation7 + $0x60] ss:$8 sps:$4 sm:$0xff]   ;;  %v1166_v9 = vld [vmem:[#allocation7 + $0x54] ss:$8 sps:$4 sm:$0xff]  }
  0x29   :  { %884 = vmatprep.subr.mxu0 %v93_v2  ;;  %946 = vmatpush1.bf16.msra.mxu1 %v1157_v4  ;;  %v91_v7 = vld [vmem:[#allocation5 + $0x60] sm:$0xff]  ;;  %v90_v10 = vld [vmem:[#allocation5 + $0x58] sm:$0xff]  ;;  %v89_v11 = vld [vmem:[#allocation5 + $0x50] sm:$0xff] }
  0x2a   :  { %885 = vmatpush3.msra.mxu0 %v93_v2  ;;  %939 = vmatprep.subr.bf16.mxu1 %v1160_v6  ;;  %v1169_v12 = vld [vmem:[#allocation7 + $0x50] ss:$8 sps:$4 sm:$0xff]   ;;  %v1172_v13 = vld [vmem:[#allocation7 + $0x44] ss:$8 sps:$4 sm:$0xff]   ;;  %v1175_v16 = vld [vmem:[#allocation7 + $0x40] ss:$8 sps:$4 sm:$0xff]  }
  0x2b   :  { %886 = vmatprep.subr.mxu0 %v92_v5  ;;  %v88_v14 = vld [vmem:[#allocation5 + $0x48] sm:$0xff]  ;;  %v87_v15 = vld [vmem:[#allocation5 + $0x40] sm:$0xff]  ;;  %v1178_v17 = vld [vmem:[#allocation7 + $0x34] ss:$8 sps:$4 sm:$0xff]  }
  0x2c   :  { %887 = vmatpush3.msra.mxu0 %v92_v5  ;;  %v86_v18 = vld [vmem:[#allocation5 + $0x38] sm:$0xff]  ;;  %v1180_v19 = vld [vmem:[#allocation2] sm:$0xff]  ;;  %v85_v20 = vld [vmem:[#allocation5 + $0x30] sm:$0xff] }
  0x2d   :  { %888 = vmatprep.subr.mxu0 %v91_v7  ;;  %947 = vmatpush1.bf16.msra.mxu1 %v1163_v8  ;;  %v1183_v21 = vld [vmem:[#allocation7 + $0x30] ss:$8 sps:$4 sm:$0xff]   ;;  %v1186_v22 = vld [vmem:[#allocation7 + $0x24] ss:$8 sps:$4 sm:$0xff]   ;;  %v1190_v25 = vld [vmem:[#allocation7 + $0x20] ss:$8 sps:$4 sm:$0xff]  }
  0x2e   :  { %889 = vmatpush3.msra.mxu0 %v91_v7  ;;  %940 = vmatprep.subr.bf16.mxu1 %v1166_v9  ;;  %v84_v23 = vld [vmem:[#allocation5 + $0x28] sm:$0xff]  ;;  %v83_v24 = vld [vmem:[#allocation5 + $0x20] sm:$0xff]  ;;  %v1193_v26 = vld [vmem:[#allocation7 + $0x14] ss:$8 sps:$4 sm:$0xff]  }
  0x2f   :  { %890 = vmatprep.subr.mxu0 %v90_v10  ;;  %914 = vmatprep.mubr.f32.mxu0 %v1180_v19  ;;  %v82_v27 = vld [vmem:[#allocation5 + $0x18] sm:$0xff]  ;;  %v81_v28 = vld [vmem:[#allocation5 + $0x10] sm:$0xff]  ;;  %v1199_v30 = vld [vmem:[#allocation7 + $0x4] ss:$8 sps:$4 sm:$0xff]  }
  0x30   :  { %891 = vmatpush3.msra.mxu0 %v90_v10  ;;  %v1196_v29 = vld [vmem:[#allocation7 + $0x10] ss:$8 sps:$4 sm:$0xff]   ;;  %v80_v31 = vld [vmem:[#allocation5 + $0x8] sm:$0xff]  ;;  %v79_v32 = vld [vmem:[#allocation5] sm:$0xff] }
  0x31   :  { %892 = vmatprep.subr.mxu0 %v89_v11  ;;  %948 = vmatpush1.bf16.msra.mxu1 %v1169_v12  ;;  %v1202_v33 = vld [vmem:[#allocation7] ss:$8 sps:$4 sm:$0xff]   ;;  %v1205_v38 = vld [vmem:[#allocation2 + $0x10] sm:$0xff]  ;;  %v66_v39 = vld [vmem:[#allocation2 + $0x18] sm:$0xff] }
  0x32   :  { %893 = vmatpush3.msra.mxu0 %v89_v11  ;;  %941 = vmatprep.subr.bf16.mxu1 %v1172_v13  ;;  %v67_v34 = vld [vmem:[#allocation2 + $0x20] sm:$0xff]  ;;  %v68_v35 = vld [vmem:[#allocation2 + $0x28] sm:$0xff]  ;;  %v69_v40 = vld [vmem:[#allocation2 + $0x30] sm:$0xff]  ;;  %v264_v55 = vpack.c.bf16 %v66_v39, %v1205_v38 }
  0x33   :  { %894 = vmatprep.subr.mxu0 %v88_v14  ;;  %v64_v36 = vld [vmem:[#allocation2 + $0x8] sm:$0xff]  ;;  %v265_v37 = vpack.c.bf16 %v68_v35, %v67_v34  ;;  %v70_v41 = vld [vmem:[#allocation2 + $0x38] sm:$0xff]  ;;  %v71_v43 = vld [vmem:[#allocation2 + $0x40] sm:$0xff] }
  0x34   :  { %895 = vmatpush3.msra.mxu0 %v88_v14  ;;  %v266_v42 = vpack.c.bf16 %v70_v41, %v69_v40  ;;  %v72_v44 = vld [vmem:[#allocation2 + $0x48] sm:$0xff]  ;;  %v73_v46 = vld [vmem:[#allocation2 + $0x50] sm:$0xff]  ;;  %v74_v47 = vld [vmem:[#allocation2 + $0x58] sm:$0xff]  ;;  %v263_v53 = vpack.c.bf16 %v64_v36, %v1180_v19 }
  0x35   :  { %896 = vmatprep.subr.mxu0 %v87_v15  ;;  %949 = vmatpush1.bf16.msra.mxu1 %v1175_v16  ;;  %v267_v45 = vpack.c.bf16 %v72_v44, %v71_v43  ;;  %v75_v48 = vld [vmem:[#allocation2 + $0x60] sm:$0xff]  ;;  %v76_v49 = vld [vmem:[#allocation2 + $0x68] sm:$0xff]  ;;  %v268_v50 = vpack.c.bf16 %v74_v47, %v73_v46  ;;  %v77_v51 = vld [vmem:[#allocation2 + $0x70] sm:$0xff] }
  0x36   :  { %897 = vmatpush3.msra.mxu0 %v87_v15  ;;  %942 = vmatprep.subr.bf16.mxu1 %v1178_v17  ;;  %v78_v52 = vld [vmem:[#allocation2 + $0x78] sm:$0xff]  ;;  %v269_v54 = vpack.c.bf16 %v76_v49, %v75_v48  ;;  %v1237_v57 = vld [vmem:[%s1267_s3] ss:$0 sm:$0xff]  ;;  %s1102_s3 = smov [#allocation8]  }
  0x37   :  { %898 = vmatprep.subr.mxu0 %v86_v18  ;;  %v270_v56 = vpack.c.bf16 %v78_v52, %v77_v51  ;;  %s646_s9 = sshll.u32 %s1102_s3, 4  ;;  %s647_s9 = int_to_ptr.vmem [resolvable:$true] %s646_s9 }
  0x38   :  { %899 = vmatpush3.msra.mxu0 %v86_v18  ;;  %s1048_s10 = scalar_lea.vmem %s647_s9, 2048  ;;  %p1053_p2 = scmp.lt.s32.totalorder %s647_s9, %s647_s9 }
  0x39   :  { %900 = vmatprep.subr.mxu0 %v85_v20  ;;  %950 = vmatpush1.bf16.msra.mxu1 %v1183_v21  ;;  %p1049_p1 = scmp.ne.s32.totalorder %s647_s9, %s1048_s10  ;;  %p1054_p3 = scmp.lt.s32.totalorder %s1048_s10, %s1048_s10 }
  0x3a   :  { %901 = vmatpush3.msra.mxu0 %v85_v20  ;;  %943 = vmatprep.subr.bf16.mxu1 %v1186_v22 }
  0x3b   :  { %902 = vmatprep.subr.mxu0 %v84_v23  ;;  %p1055_p4 = por %p1054_p3, %p1053_p2 }
  0x3c   :  { %903 = vmatpush3.msra.mxu0 %v84_v23 }
  0x3d   :  { %904 = vmatprep.subr.mxu0 %v83_v24  ;;  %951 = vmatpush1.bf16.msra.mxu1 %v1190_v25  ;;  %p1056_p5 = pnand %p1055_p4, %p1049_p1 }
  0x3e   :  { %905 = vmatpush3.msra.mxu0 %v83_v24  ;;  %944 = vmatprep.subr.bf16.mxu1 %v1193_v26 }
  0x3f   :  { %906 = vmatprep.subr.mxu0 %v82_v27 }
  0x40   :  { %907 = vmatpush3.msra.mxu0 %v82_v27 }
  0x41   :  { %908 = vmatprep.subr.mxu0 %v81_v28  ;;  %952 = vmatpush1.bf16.msra.mxu1 %v1196_v29 }
  0x42   :  { %909 = vmatpush3.msra.mxu0 %v81_v28  ;;  %945 = vmatprep.subr.bf16.mxu1 %v1199_v30 }
  0x43   :  { %910 = vmatprep.subr.mxu0 %v80_v31 }
  0x44   :  { %911 = vmatpush3.msra.mxu0 %v80_v31 }
  0x45   :  { %912 = vmatprep.subr.mxu0 %v79_v32  ;;  %953 = vmatpush1.bf16.msra.mxu1 %v1202_v33 }
  0x46   :  { %913 = vmatpush3.msra.mxu0 %v79_v32 }
  0x47   :  { %915 = vmatmul.mubr.f32.vlgmr.msra.gmra.mxu0 %v64_v36  ;;  %367 = vmatprep.subr.bf16.mxu0 %v1155_v3 }
  0x48   :  { %368 = vmatpush1.bf16.msra.mxu0 %v1157_v4  ;;  %917 = vmatprep.mubr.f32.mxu0 %v1205_v38 }
  0x49   :  { %420 = vmatmul.mubr.bf16.vlgmr.msra.gmra.mxu1 %v265_v37  ;;  %369 = vmatprep.subr.bf16.mxu0 %v1160_v6 }
  0x4a   :  { %429 = vmatprep.mubr.bf16.mxu1 %v1101_v0 }
  0x4b   :  { %918 = vmatmul.mubr.f32.gmra.mxu0 %v66_v39 }
  0x4c   :  { %370 = vmatpush1.bf16.msra.mxu0 %v1163_v8  ;;  %920 = vmatprep.mubr.f32.mxu0 %v67_v34 }
  0x4d   :  { %371 = vmatprep.subr.bf16.mxu0 %v1166_v9 }
  0x4f   :  { %921 = vmatmul.mubr.f32.gmra.mxu0 %v68_v35 }
  0x50   :  { %372 = vmatpush1.bf16.msra.mxu0 %v1169_v12  ;;  %923 = vmatprep.mubr.f32.mxu0 %v69_v40 }
  0x51   :  { %430 = vmatmul.mubr.bf16.gmra.mxu1 %v266_v42  ;;  %373 = vmatprep.subr.bf16.mxu0 %v1172_v13 }
  0x52   :  { %439 = vmatprep.mubr.bf16.mxu1 %v1101_v0 }
  0x53   :  { %924 = vmatmul.mubr.f32.gmra.mxu0 %v70_v41 }
  0x54   :  { %374 = vmatpush1.bf16.msra.mxu0 %v1175_v16  ;;  %926 = vmatprep.mubr.f32.mxu0 %v71_v43 }
  0x55   :  { %375 = vmatprep.subr.bf16.mxu0 %v1178_v17 }
  0x57   :  { %927 = vmatmul.mubr.f32.gmra.mxu0 %v72_v44 }
  0x58   :  { %376 = vmatpush1.bf16.msra.mxu0 %v1183_v21  ;;  %929 = vmatprep.mubr.f32.mxu0 %v73_v46 }
  0x59   :  { %440 = vmatmul.mubr.bf16.gmra.mxu1 %v267_v45  ;;  %377 = vmatprep.subr.bf16.mxu0 %v1186_v22 }
  0x5a   :  { %449 = vmatprep.mubr.bf16.mxu1 %v1101_v0 }
  0x5b   :  { %930 = vmatmul.mubr.f32.gmra.mxu0 %v74_v47 }
  0x5c   :  { %378 = vmatpush1.bf16.msra.mxu0 %v1190_v25  ;;  %932 = vmatprep.mubr.f32.mxu0 %v75_v48 }
  0x5d   :  { %379 = vmatprep.subr.bf16.mxu0 %v1193_v26 }
  0x5f   :  { %933 = vmatmul.mubr.f32.gmra.mxu0 %v76_v49 }
  0x60   :  { %380 = vmatpush1.bf16.msra.mxu0 %v1196_v29  ;;  %935 = vmatprep.mubr.f32.mxu0 %v77_v51 }
  0x61   :  { %450 = vmatmul.mubr.bf16.gmra.mxu1 %v268_v50  ;;  %381 = vmatprep.subr.bf16.mxu0 %v1199_v30 }
  0x62   :  { %459 = vmatprep.mubr.bf16.mxu1 %v1101_v0 }
  0x63   :  { %936 = vmatmul.mubr.f32.gmra.mxu0 %v78_v52 }
  0x64   :  { %382 = vmatpush1.bf16.msra.mxu0 %v1202_v33  ;;  %399 = vmatprep.mubr.bf16.mxu0 %v1101_v0 }
  0x67   :  { %400 = vmatmul.mubr.bf16.vlgmr.msra.gmra.mxu0 %v263_v53 }
  0x68   :  { %409 = vmatprep.mubr.bf16.mxu0 %v1101_v0 }
  0x69   :  { %460 = vmatmul.mubr.bf16.gmra.mxu1 %v269_v54 }
  0x6a   :  { %469 = vmatprep.mubr.bf16.mxu1 %v1101_v0 }
  0x6f   :  { %410 = vmatmul.mubr.bf16.gmra.mxu0 %v264_v55 }
  0x71   :  { %470 = vmatmul.mubr.bf16.gmra.mxu1 %v270_v56 }
 0x107   :  { %v916_v58 = vpop.f32.mrf.mxu0 }
 0x108   :  { %v174_v59 = vadd.f32 %v916_v58, %v1237_v57 }
 0x109   :  { %v168_v60 = vpop.f32.mrf.mxu0  ;;  %v421_v61 = vpop.f32.mrf.mxu1 }
 0x10a   :  { %248 = vst [vmem:[#allocation8 + $0x8] sm:$0xff] %v174_v59  ;;  %v169_v62 = vadd.f32 %v1237_v57, %v168_v60 }
 0x10b   :  { %v919_v63 = vpop.f32.mrf.mxu0  ;;  %v423_v0 = vpop.f32.mrf.mxu1 }
 0x10c   :  { %247 = vst [vmem:[#allocation8] sm:$0xff] %v169_v62  ;;  %v184_v1 = vadd.f32 %v919_v63, %v1237_v57 }
 0x10d   :  { %v178_v2 = vpop.f32.mrf.mxu0  ;;  %v425_v3 = vpop.f32.mrf.mxu1 }
 0x10e   :  { %250 = vst [vmem:[#allocation8 + $0x18] sm:$0xff] %v184_v1  ;;  %v179_v4 = vadd.f32 %v1237_v57, %v178_v2  ;;  %v769_v5 = vpack.c.bf16 %v425_v3, %v421_v61 }
 0x10f   :  { %v922_v6 = vpop.f32.mrf.mxu0  ;;  %v427_v7 = vpop.f32.mrf.mxu1 }
 0x110   :  { %249 = vst [vmem:[#allocation8 + $0x10] sm:$0xff] %v179_v4  ;;  %837 = vst [vmem:[#allocation9 + $0x10] sm:$0xff] %v769_v5   ;;  %v194_v8 = vadd.f32 %v922_v6, %v1237_v57  ;;  %v809_v9 = vpack.c.bf16 %v427_v7, %v423_v0 }
 0x111   :  { %v188_v10 = vpop.f32.mrf.mxu0  ;;  %v431_v11 = vpop.f32.mrf.mxu1 }
 0x112   :  { %252 = vst [vmem:[#allocation8 + $0x28] sm:$0xff] %v194_v8  ;;  %844 = vst [vmem:[#allocation9 + $0x50] sm:$0xff] %v809_v9   ;;  %v189_v12 = vadd.f32 %v1237_v57, %v188_v10 }
 0x113   :  { %v925_v13 = vpop.f32.mrf.mxu0  ;;  %v433_v14 = vpop.f32.mrf.mxu1 }
 0x114   :  { %251 = vst [vmem:[#allocation8 + $0x20] sm:$0xff] %v189_v12  ;;  %v204_v15 = vadd.f32 %v925_v13, %v1237_v57 }
 0x115   :  { %v198_v16 = vpop.f32.mrf.mxu0  ;;  %v435_v17 = vpop.f32.mrf.mxu1 }
 0x116   :  { %254 = vst [vmem:[#allocation8 + $0x38] sm:$0xff] %v204_v15  ;;  %v199_v18 = vadd.f32 %v1237_v57, %v198_v16  ;;  %v774_v19 = vpack.c.bf16 %v435_v17, %v431_v11 }
 0x117   :  { %v928_v20 = vpop.f32.mrf.mxu0  ;;  %v437_v21 = vpop.f32.mrf.mxu1 }
 0x118   :  { %253 = vst [vmem:[#allocation8 + $0x30] sm:$0xff] %v199_v18  ;;  %838 = vst [vmem:[#allocation9 + $0x18] sm:$0xff] %v774_v19   ;;  %v214_v22 = vadd.f32 %v928_v20, %v1237_v57  ;;  %v814_v23 = vpack.c.bf16 %v437_v21, %v433_v14 }
 0x119   :  { %v208_v24 = vpop.f32.mrf.mxu0  ;;  %v441_v25 = vpop.f32.mrf.mxu1 }
 0x11a   :  { %256 = vst [vmem:[#allocation8 + $0x48] sm:$0xff] %v214_v22  ;;  %845 = vst [vmem:[#allocation9 + $0x58] sm:$0xff] %v814_v23   ;;  %v209_v26 = vadd.f32 %v1237_v57, %v208_v24 }
 0x11b   :  { %v931_v27 = vpop.f32.mrf.mxu0  ;;  %v443_v28 = vpop.f32.mrf.mxu1 }
 0x11c   :  { %255 = vst [vmem:[#allocation8 + $0x40] sm:$0xff] %v209_v26  ;;  %v224_v29 = vadd.f32 %v931_v27, %v1237_v57 }
 0x11d   :  { %v218_v30 = vpop.f32.mrf.mxu0  ;;  %v445_v31 = vpop.f32.mrf.mxu1 }
 0x11e   :  { %258 = vst [vmem:[#allocation8 + $0x58] sm:$0xff] %v224_v29  ;;  %v219_v32 = vadd.f32 %v1237_v57, %v218_v30  ;;  %v779_v33 = vpack.c.bf16 %v445_v31, %v441_v25 }
 0x11f   :  { %v934_v34 = vpop.f32.mrf.mxu0  ;;  %v447_v35 = vpop.f32.mrf.mxu1 }
 0x120   :  { %257 = vst [vmem:[#allocation8 + $0x50] sm:$0xff] %v219_v32  ;;  %839 = vst [vmem:[#allocation9 + $0x20] sm:$0xff] %v779_v33   ;;  %v234_v36 = vadd.f32 %v934_v34, %v1237_v57  ;;  %v819_v37 = vpack.c.bf16 %v447_v35, %v443_v28 }
 0x121   :  { %v228_v38 = vpop.f32.mrf.mxu0  ;;  %v451_v39 = vpop.f32.mrf.mxu1 }
 0x122   :  { %260 = vst [vmem:[#allocation8 + $0x68] sm:$0xff] %v234_v36  ;;  %846 = vst [vmem:[#allocation9 + $0x60] sm:$0xff] %v819_v37   ;;  %v229_v40 = vadd.f32 %v1237_v57, %v228_v38 }
 0x123   :  { %v937_v41 = vpop.f32.mrf.mxu0  ;;  %v453_v42 = vpop.f32.mrf.mxu1 }
 0x124   :  { %259 = vst [vmem:[#allocation8 + $0x60] sm:$0xff] %v229_v40  ;;  %v244_v43 = vadd.f32 %v937_v41, %v1237_v57 }
 0x125   :  { %v238_v44 = vpop.f32.mrf.mxu0  ;;  %v455_v45 = vpop.f32.mrf.mxu1 }
 0x126   :  { %262 = vst [vmem:[#allocation8 + $0x78] sm:$0xff] %v244_v43  ;;  %v239_v46 = vadd.f32 %v1237_v57, %v238_v44  ;;  %v784_v47 = vpack.c.bf16 %v455_v45, %v451_v39 }
 0x127   :  { %v401_v48 = vpop.f32.mrf.mxu0  ;;  %v457_v49 = vpop.f32.mrf.mxu1 }
 0x128   :  { %261 = vst [vmem:[#allocation8 + $0x70] sm:$0xff] %v239_v46  ;;  %840 = vst [vmem:[#allocation9 + $0x28] sm:$0xff] %v784_v47   ;;  %v824_v50 = vpack.c.bf16 %v457_v49, %v453_v42 }
 0x129   :  { %v403_v51 = vpop.f32.mrf.mxu0  ;;  %v461_v52 = vpop.f32.mrf.mxu1 }
 0x12a   :  { %1059 = shalt.err (!%p1056_p5)
}
 0x12b   :  { %652 = dma.vmem_to_hbm [thread:$0]  %s647_s9, 2048, %s1268_s4, [#allocation4], %s1098_s23, %s1098_s23, %s1099_s24   ;;  %847 = vst [vmem:[#allocation9 + $0x68] sm:$0xff] %v824_v50   ;;  %v405_v53 = vpop.f32.mrf.mxu0  ;;  %v463_v54 = vpop.f32.mrf.mxu1 }
 0x12c   :  { %v759_v55 = vpack.c.bf16 %v405_v53, %v401_v48  ;;  %s1103_s4 = smov [#allocation9]  }
 0x12d   :  { %v407_v56 = vpop.f32.mrf.mxu0  ;;  %v465_v57 = vpop.f32.mrf.mxu1  ;;  %s658_s13 = sshll.u32 %s1103_s4, 4  ;;  %s659_s13 = int_to_ptr.vmem [resolvable:$true] %s658_s13 }
 0x12e   :  { %760 = vst [vmem:[#allocation9] sm:$0xff] %v759_v55   ;;  %v799_v58 = vpack.c.bf16 %v407_v56, %v403_v51  ;;  %v789_v59 = vpack.c.bf16 %v465_v57, %v461_v52  ;;  %s1068_s14 = scalar_lea.vmem %s659_s13, 2048  ;;  %p1073_p7 = scmp.lt.s32.totalorder %s659_s13, %s659_s13 }
 0x12f   :  { %v411_v60 = vpop.f32.mrf.mxu0  ;;  %v467_v61 = vpop.f32.mrf.mxu1  ;;  %p1069_p6 = scmp.ne.s32.totalorder %s659_s13, %s1068_s14  ;;  %p1074_p8 = scmp.lt.s32.totalorder %s1068_s14, %s1068_s14 }
 0x130   :  { %800 = vst [vmem:[#allocation9 + $0x40] sm:$0xff] %v799_v58   ;;  %841 = vst [vmem:[#allocation9 + $0x30] sm:$0xff] %v789_v59   ;;  %v829_v62 = vpack.c.bf16 %v467_v61, %v463_v54 }
 0x131   :  { %v413_v63 = vpop.f32.mrf.mxu0  ;;  %v471_v0 = vpop.f32.mrf.mxu1  ;;  %p1075_p9 = por %p1074_p8, %p1073_p7 }
 0x132   :  { %848 = vst [vmem:[#allocation9 + $0x70] sm:$0xff] %v829_v62  }
 0x133   :  { %v415_v1 = vpop.f32.mrf.mxu0  ;;  %v473_v2 = vpop.f32.mrf.mxu1  ;;  %p1076_p10 = pnand %p1075_p9, %p1069_p6 }
 0x134   :  { %v764_v3 = vpack.c.bf16 %v415_v1, %v411_v60 }
 0x135   :  { %v417_v4 = vpop.f32.mrf.mxu0  ;;  %v475_v5 = vpop.f32.mrf.mxu1 }
 0x136   :  { %836 = vst [vmem:[#allocation9 + $0x8] sm:$0xff] %v764_v3   ;;  %v804_v6 = vpack.c.bf16 %v417_v4, %v413_v63  ;;  %v794_v7 = vpack.c.bf16 %v475_v5, %v471_v0 }
 0x137   :  { %v477_v8 = vpop.f32.mrf.mxu1 }
 0x138   :  { %843 = vst [vmem:[#allocation9 + $0x48] sm:$0xff] %v804_v6   ;;  %842 = vst [vmem:[#allocation9 + $0x38] sm:$0xff] %v794_v7   ;;  %v834_v9 = vpack.c.bf16 %v477_v8, %v473_v2 }
 0x13a   :  { %849 = vst [vmem:[#allocation9 + $0x78] sm:$0xff] %v834_v9  }
 0x13b   :  { %1079 = shalt.err (!%p1076_p10)
}
 0x13c   :  { %s1104_s15 = smov 64   ;;  %s1105_s16 = smov 4  }
 0x13d   :  { %664 = dma.vmem_to_hbm [thread:$0]  %s659_s13, 2048, %s1269_s5, [#allocation10], %s1104_s15, %s1104_s15, %s1105_s16  }
 0x13e   :  { %1092 = dma.done.wait [#allocation4], 2048  }
 0x13f   :  { %1093 = vsyncadd [#allocation4], 4294965248 }
 0x140   :  { %1094 = dma.done.wait [#allocation10], 2048  }
 0x141   :  { %1095 = vsyncadd [#allocation10], 4294965248 }
 0x142   :  { %671 = vsyncpa [#allocation3], 1 }
 0x143   :  { %672 = vsyncpa [#allocation6], 1 }
 0x144   :  { %673 = vsyncpa [#allocation4], 1 }
 0x145   :  { %674 = vsyncpa [#allocation10], 1 }

</bundles_post_ra>
